<compile_context>
chip_gen: v6e
topology: v6e:2x2x1
jax: 0.10.0
libtpu: 0.0.40
codegen_flags: <defaults>
</compile_context>

<pallas_src>
import functools

import jax
import jax.numpy as jnp
import numpy as np
from jax.experimental import pallas as pl
from jax.experimental.pallas import tpu as pltpu

_LANE = 128            # vreg lane width
_MAX_TILE_ROWS = 2048  # up to 2048*128 lanes (~1 MiB per f32 stream) per grid step


def _pair_ce_kernel(logit_ref, label_ref, w_ref, out_ref, acc_nll, acc_w, *,
                    tile_rows, num_rows, n_full_tiles, tiles_per_group, need_edge):
    """Weighted 2-class cross-entropy partial sums for one (batch, group, row-tile) block.

    logit_ref: (1, 2, tile_rows, 128) VMEM, native dtype   two class planes
    label_ref: (1, tile_rows, 128)    VMEM, int            1 -> positive class
    w_ref    : (1, tile_rows, 128)    VMEM, int/float      per-element weight
    out_ref  : (1, 1, 2, 128) f32 VMEM  per-(batch, group) per-lane partials:
               row 0 = sum(nll * w), row 1 = sum(w)
    acc_*    : (8, 128) f32 VMEM scratch accumulators (live across the row-tile axis)
    """
    g = pl.program_id(1)
    t = pl.program_id(2)
    gt = g * tiles_per_group + t            # global row-tile index (may overflow range)

    @pl.when(t == 0)
    def _():
        acc_nll[...] = jnp.zeros_like(acc_nll)
        acc_w[...] = jnp.zeros_like(acc_w)

    # Cast after the load (keeps the HBM stream narrow if logits arrive as bf16).
    d = logit_ref[0, 1].astype(jnp.float32) - logit_ref[0, 0].astype(jnp.float32)
    lbl = label_ref[0]
    w = w_ref[0].astype(jnp.float32)
    groups = tile_rows // 8

    def accumulate(d, w):
        # 2-class CE: nll = softplus(l_{1-y} - l_y) = softplus(where(y==0, d, -d)).
        z = jnp.where(lbl > 0, -d, d)
        sp = jnp.maximum(z, 0.0) + jnp.log1p(jnp.exp(-jnp.abs(z)))
        # Reduce each tile into one (8,128) vreg with pure vreg adds (no cross-lane moves).
        acc_nll[...] += jnp.sum((sp * w).reshape(groups, 8, _LANE), axis=0)
        acc_w[...] += jnp.sum(w.reshape(groups, 8, _LANE), axis=0)

    if need_edge:
        @pl.when(gt < n_full_tiles)
        def _():                            # interior tiles: mask-free fast path
            accumulate(d, w)

        @pl.when(gt >= n_full_tiles)
        def _():
            # Edge / overflow tile: rows past num_rows are uninitialized VMEM -> mask the
            # logits too so no Inf/NaN can leak through the zero weight.
            row = gt * tile_rows + jax.lax.broadcasted_iota(jnp.int32, d.shape, 0)
            valid = row < num_rows
            accumulate(jnp.where(valid, d, 0.0), jnp.where(valid, w, 0.0))
    else:
        accumulate(d, w)

    @pl.when(t == pl.num_programs(2) - 1)
    def _():
        out_ref[0, 0, 0:1, :] = jnp.sum(acc_nll[...], axis=0, keepdims=True)
        out_ref[0, 0, 1:2, :] = jnp.sum(acc_w[...], axis=0, keepdims=True)


def weighted_cross_entropy(ins_logit, ins_label, weight, *, max_tile_rows=_MAX_TILE_ROWS):
    """Masked-mean cross-entropy: sum(nll * weight) / (sum(weight) + 1e-12).

    ins_logit: (B, 2, NC, NN) float (any float dtype — NOT upcast in the wrapper).
    ins_label / weight: (B, NC, NN) int / bool / float.
    """
    B, C, NC, NN = ins_logit.shape
    assert C == 2, "pair instance loss is 2-class"  # TODO(synk): general-C CE not needed here
    n = NC * NN

    logits = ins_logit.reshape(B, C, n)              # free reshape; no transpose, no upcast
    label = ins_label.reshape(B, n)
    w = weight.reshape(B, n)
    if label.dtype == jnp.bool_:
        label = label.astype(jnp.int32)
    if w.dtype == jnp.bool_:
        w = w.astype(jnp.int32)

    # Row alignment: 8 sublanes for 4-byte logits, 16 for bf16/f16, 32 for 1-byte dtypes.
    row_align = {4: 8, 2: 16, 1: 32}.get(ins_logit.dtype.itemsize, 8)

    r = -(-n // _LANE)                               # rows of 128 lanes
    if r < row_align:
        n_pad = row_align * _LANE                    # tiny input: pad a few rows (negligible)
    else:
        n_pad = r * _LANE                            # only lane-pad when n % 128 != 0
    if n_pad != n:
        pad = n_pad - n                              # padded weight is 0 -> contributes 0
        logits = jnp.pad(logits, ((0, 0), (0, 0), (0, pad)))
        label = jnp.pad(label, ((0, 0), (0, pad)))
        w = jnp.pad(w, ((0, 0), (0, pad)))
    r = n_pad // _LANE
    logits = logits.reshape(B, C, r, _LANE)
    label = label.reshape(B, r, _LANE)
    w = w.reshape(B, r, _LANE)

    tile_rows = min(max_tile_rows, (r // row_align) * row_align)
    tile_rows = max(row_align, (tile_rows // row_align) * row_align)
    n_tiles = -(-r // tile_rows)
    n_full_tiles = r // tile_rows                    # tiles fully inside [0, r)

    # v7x: give both TensorCores work even at small batch by splitting the row range into
    # G parallel groups; harmless on single-core v5e/v6e.
    G = 2 if (B < 4 and n_tiles >= 2) else 1
    tiles_per_group = -(-n_tiles // G)
    need_edge = (r % tile_rows != 0) or (G * tiles_per_group != n_tiles)
    last_block = n_tiles - 1

    def row_block(g, t):
        # Clamp overflow tiles of the last group; their rows are fully masked in-kernel.
        return jnp.minimum(g * tiles_per_group + t, last_block)

    kernel = functools.partial(
        _pair_ce_kernel, tile_rows=tile_rows, num_rows=r, n_full_tiles=n_full_tiles,
        tiles_per_group=tiles_per_group, need_edge=need_edge)

    partials = pl.pallas_call(
        kernel,
        out_shape=jax.ShapeDtypeStruct((B, G, 2, _LANE), jnp.float32),
        grid_spec=pltpu.PrefetchScalarGridSpec(
            num_scalar_prefetch=0,
            grid=(B, G, tiles_per_group),
            in_specs=[
                pl.BlockSpec((1, C, tile_rows, _LANE),
                             lambda b, g, t: (b, 0, row_block(g, t), 0)),
                pl.BlockSpec((1, tile_rows, _LANE),
                             lambda b, g, t: (b, row_block(g, t), 0)),
                pl.BlockSpec((1, tile_rows, _LANE),
                             lambda b, g, t: (b, row_block(g, t), 0)),
            ],
            out_specs=pl.BlockSpec((1, 1, 2, _LANE), lambda b, g, t: (b, g, 0, 0)),
            scratch_shapes=[
                pltpu.VMEM((8, _LANE), jnp.float32),
                pltpu.VMEM((8, _LANE), jnp.float32),
            ],
        ),
        compiler_params=pltpu.CompilerParams(
            dimension_semantics=("parallel", "parallel", "arbitrary"),
            vmem_limit_bytes=32 * 1024 * 1024,
        ),
    )(logits, label, w)

    total_nll = jnp.sum(partials[:, :, 0, :])
    total_w = jnp.sum(partials[:, :, 1, :])
    return total_nll / (total_w + 1e-12)


def pair_ins_seg_loss(preds, data_batch, ins_weight=1.0):
    """JAX/Pallas equivalent of PairInsSegLoss.forward (sampler=None path)."""
    assert ins_weight > 0.0
    ins_logit = preds["ins_logit"]  # (B, 2, NC, NN)

    if "ins_label" not in data_batch:
        neighbour_index = preds["neighbour_index"]      # (B, NC, NN) int
        centroid_index = preds["centroid_index"]        # (B, NC) int
        ins_id = data_batch["ins_id"]                   # (B, P) int
        B, NC, NN = neighbour_index.shape
        # glue: data-dependent gathers (== torch.gather along dim 1)
        neighbour_label = jnp.take_along_axis(
            ins_id, neighbour_index.reshape(B, NC * NN), axis=1).reshape(B, NC, NN)
        centroid_label = jnp.take_along_axis(ins_id, centroid_index, axis=1).reshape(B, NC, 1)
        ins_label = (neighbour_label == centroid_label).astype(jnp.int32)
        # Mirrors the torch module's in-place store (note: mutating a dict with a traced
        # array is a functional-purity hazard under jit; kept for spec parity).
        data_batch["ins_label"] = ins_label
    else:
        ins_label = data_batch["ins_label"]

    # TODO(synk): self.sampler (hard-example weighting) not implemented; sampler=None path only.
    valid_mask = data_batch["valid_mask"]               # passed raw; cast to f32 in-kernel

    ins_loss = weighted_cross_entropy(ins_logit, ins_label, valid_mask)
    return {"ins_loss": ins_loss * ins_weight}


def _reference_loss(ins_logit, ins_label, weight):
    """Pure-JAX reference for the weighted cross-entropy."""
    logp = jax.nn.log_softmax(ins_logit.astype(jnp.float32), axis=1)        # (B,C,NC,NN)
    picked = jnp.take_along_axis(logp, ins_label[:, None].astype(jnp.int32), axis=1)[:, 0]
    nll = -picked
    w = weight.astype(jnp.float32)
    return jnp.sum(nll * w) / (jnp.sum(w) + 1e-12)


if __name__ == "__main__":
    key = jax.random.PRNGKey(0)

    # --- Test 1: full module path (labels built from gathers), default tiling (fast path). ---
    B, C, NC, NN, P = 2, 2, 8, 16, 64          # batch, classes(=2), centroids, neighbours, points
    k1, k2, k3, k4, k5 = jax.random.split(key, 5)
    ins_logit = jax.random.normal(k1, (B, C, NC, NN), dtype=jnp.float32)
    neighbour_index = jax.random.randint(k2, (B, NC, NN), 0, P, dtype=jnp.int32)
    centroid_index = jax.random.randint(k3, (B, NC), 0, P, dtype=jnp.int32)
    ins_id = jax.random.randint(k4, (B, P), 0, 6, dtype=jnp.int32)
    valid_mask = (jax.random.uniform(k5, (B, NC, NN)) > 0.2).astype(jnp.int32)

    preds = {"ins_logit": ins_logit, "neighbour_index": neighbour_index,
             "centroid_index": centroid_index}
    data_batch = {"ins_id": ins_id, "valid_mask": valid_mask}

    out = pair_ins_seg_loss(preds, data_batch, ins_weight=1.0)
    loss = jax.block_until_ready(out["ins_loss"])
    ref = jax.block_until_ready(_reference_loss(ins_logit, data_batch["ins_label"], valid_mask))
    np.testing.assert_allclose(np.asarray(loss), np.asarray(ref), rtol=1e-5, atol=1e-6)

    # --- Test 2: multi-tile + 2 parallel row groups + ragged last tile (small max_tile_rows). ---
    k6, k7, k8 = jax.random.split(k5, 3)
    logit2 = jax.random.normal(k6, (1, 2, 20, 64), dtype=jnp.float32)       # n = 1280 -> r = 10
    label2 = jax.random.randint(k7, (1, 20, 64), 0, 2, dtype=jnp.int32)
    w2 = jax.random.uniform(k8, (1, 20, 64), dtype=jnp.float32)             # non-binary weights
    loss2 = jax.block_until_ready(weighted_cross_entropy(logit2, label2, w2, max_tile_rows=8))
    ref2 = jax.block_until_ready(_reference_loss(logit2, label2, w2))
    np.testing.assert_allclose(np.asarray(loss2), np.asarray(ref2), rtol=1e-5, atol=1e-6)

    # --- Test 3: lane padding (n % 128 != 0) + overflow-tile clamp in the last group. ---
    k9, k10, k11 = jax.random.split(k8, 3)
    logit3 = jax.random.normal(k9, (1, 2, 33, 64), dtype=jnp.float32)       # n = 2112 -> r = 17
    label3 = jax.random.randint(k10, (1, 33, 64), 0, 2, dtype=jnp.int32)
    w3 = jax.random.uniform(k11, (1, 33, 64), dtype=jnp.float32)
    loss3 = jax.block_until_ready(weighted_cross_entropy(logit3, label3, w3, max_tile_rows=8))
    ref3 = jax.block_until_ready(_reference_loss(logit3, label3, w3))
    np.testing.assert_allclose(np.asarray(loss3), np.asarray(ref3), rtol=1e-5, atol=1e-6)

    print("KERNEL_OK")
</pallas_src>

<mosaic_0001>
module attributes {stable_mosaic.version = 11 : i64} {
  func.func @_pair_ce_kernel(%arg0: i32, %arg1: i32, %arg2: i32, %arg3: memref<1x2x8x128xf32, #tpu.memory_space<vmem>>, %arg4: memref<1x8x128xi32, #tpu.memory_space<vmem>>, %arg5: memref<1x8x128xi32, #tpu.memory_space<vmem>>, %arg6: memref<1x1x2x128xf32, #tpu.memory_space<vmem>>, %arg7: memref<8x128xf32, #tpu.memory_space<vmem>>, %arg8: memref<8x128xf32, #tpu.memory_space<vmem>>) attributes {dimension_semantics = [#tpu.dimension_semantics<parallel>, #tpu.dimension_semantics<parallel>, #tpu.dimension_semantics<arbitrary>], iteration_bounds = array<i64: 2, 1, 1>, scalar_prefetch = 0 : i64, scratch_operands = 2 : i64, tpu.core_type = #tpu.core_type<tc>, window_params = [{transform_indices = @transform_0, window_bounds = array<i64: 1, 2, 8, 128>}, {transform_indices = @transform_1, window_bounds = array<i64: 1, 8, 128>}, {transform_indices = @transform_2, window_bounds = array<i64: 1, 8, 128>}, {transform_indices = @transform_3, window_bounds = array<i64: 1, 1, 2, 128>}]} {
    %c0_i32 = arith.constant 0 : i32
    %0 = arith.cmpi eq, %arg2, %c0_i32 : i32
    %1 = arith.extui %0 : i1 to i32
    %c0_i32_0 = arith.constant 0 : i32
    %2 = arith.cmpi ne, %1, %c0_i32_0 : i32
    scf.if %2 {
      %cst_28 = arith.constant 0.000000e+00 : f32
      %40 = vector.broadcast %cst_28 : f32 to vector<8x128xf32>
      %c0_29 = arith.constant 0 : index
      %c0_30 = arith.constant 0 : index
      %41 = vector.load %arg7[%c0_29, %c0_30] : memref<8x128xf32, #tpu.memory_space<vmem>>, vector<8x128xf32>
      tpu.vector_store %arg7[%c0_29, %c0_30], %40 {strides = array<i32>} : memref<8x128xf32, #tpu.memory_space<vmem>>, vector<8x128xf32>,
      %cst_31 = arith.constant 0.000000e+00 : f32
      %42 = vector.broadcast %cst_31 : f32 to vector<8x128xf32>
      %c0_32 = arith.constant 0 : index
      %c0_33 = arith.constant 0 : index
      %43 = vector.load %arg8[%c0_32, %c0_33] : memref<8x128xf32, #tpu.memory_space<vmem>>, vector<8x128xf32>
      tpu.vector_store %arg8[%c0_32, %c0_33], %42 {strides = array<i32>} : memref<8x128xf32, #tpu.memory_space<vmem>>, vector<8x128xf32>,
    } else {
    }
    %c0 = arith.constant 0 : index
    %c1 = arith.constant 1 : index
    %c0_1 = arith.constant 0 : index
    %c0_2 = arith.constant 0 : index
    %3 = vector.load %arg3[%c0, %c1, %c0_1, %c0_2] : memref<1x2x8x128xf32, #tpu.memory_space<vmem>>, vector<1x1x8x128xf32>
    %4 = vector.shape_cast %3 : vector<1x1x8x128xf32> to vector<8x128xf32>
    %c0_3 = arith.constant 0 : index
    %c0_4 = arith.constant 0 : index
    %c0_5 = arith.constant 0 : index
    %c0_6 = arith.constant 0 : index
    %5 = vector.load %arg3[%c0_3, %c0_4, %c0_5, %c0_6] : memref<1x2x8x128xf32, #tpu.memory_space<vmem>>, vector<1x1x8x128xf32>
    %6 = vector.shape_cast %5 : vector<1x1x8x128xf32> to vector<8x128xf32>
    %7 = arith.subf %4, %6 : vector<8x128xf32>
    %c0_7 = arith.constant 0 : index
    %c0_8 = arith.constant 0 : index
    %c0_9 = arith.constant 0 : index
    %8 = vector.load %arg4[%c0_7, %c0_8, %c0_9] : memref<1x8x128xi32, #tpu.memory_space<vmem>>, vector<1x8x128xi32>
    %9 = vector.shape_cast %8 : vector<1x8x128xi32> to vector<8x128xi32>
    %c0_10 = arith.constant 0 : index
    %c0_11 = arith.constant 0 : index
    %c0_12 = arith.constant 0 : index
    %10 = vector.load %arg5[%c0_10, %c0_11, %c0_12] : memref<1x8x128xi32, #tpu.memory_space<vmem>>, vector<1x8x128xi32>
    %11 = vector.shape_cast %10 : vector<1x8x128xi32> to vector<8x128xi32>
    %12 = arith.sitofp %11 : vector<8x128xi32> to vector<8x128xf32>
    %c0_i32_13 = arith.constant 0 : i32
    %13 = vector.broadcast %c0_i32_13 : i32 to vector<8x128xi32>
    %14 = arith.cmpi sgt, %9, %13 : vector<8x128xi32>
    %cst = arith.constant 0.000000e+00 : f32
    %15 = vector.broadcast %cst : f32 to vector<8x128xf32>
    %16 = arith.subf %15, %7 : vector<8x128xf32>
    %17 = arith.select %14, %16, %7 : vector<8x128xi1>, vector<8x128xf32>
    %cst_14 = arith.constant 0.000000e+00 : f32
    %18 = vector.broadcast %cst_14 : f32 to vector<8x128xf32>
    %19 = arith.maximumf %17, %18 : vector<8x128xf32>
    %20 = math.absf %17 : vector<8x128xf32>
    %cst_15 = arith.constant 0.000000e+00 : f32
    %21 = vector.broadcast %cst_15 : f32 to vector<8x128xf32>
    %22 = arith.subf %21, %20 : vector<8x128xf32>
    %23 = math.exp %22 : vector<8x128xf32>
    %24 = math.log1p %23 : vector<8x128xf32>
    %25 = arith.addf %19, %24 : vector<8x128xf32>
    %c0_16 = arith.constant 0 : index
    %c0_17 = arith.constant 0 : index
    %26 = vector.load %arg7[%c0_16, %c0_17] : memref<8x128xf32, #tpu.memory_space<vmem>>, vector<8x128xf32>
    %27 = arith.mulf %25, %12 : vector<8x128xf32>
    %28 = vector.shape_cast %27 : vector<8x128xf32> to vector<1x8x128xf32>
    %cst_18 = arith.constant dense<0.000000e+00> : vector<8x128xf32>
    %29 = vector.multi_reduction <add>, %28, %cst_18 [0] : vector<1x8x128xf32> to vector<8x128xf32>
    %30 = arith.addf %26, %29 : vector<8x128xf32>
    %c0_19 = arith.constant 0 : index
    %c0_20 = arith.constant 0 : index
    %31 = vector.load %arg7[%c0_19, %c0_20] : memref<8x128xf32, #tpu.memory_space<vmem>>, vector<8x128xf32>
    tpu.vector_store %arg7[%c0_19, %c0_20], %30 {strides = array<i32>} : memref<8x128xf32, #tpu.memory_space<vmem>>, vector<8x128xf32>,
    %c0_21 = arith.constant 0 : index
    %c0_22 = arith.constant 0 : index
    %32 = vector.load %arg8[%c0_21, %c0_22] : memref<8x128xf32, #tpu.memory_space<vmem>>, vector<8x128xf32>
    %33 = vector.shape_cast %12 : vector<8x128xf32> to vector<1x8x128xf32>
    %cst_23 = arith.constant dense<0.000000e+00> : vector<8x128xf32>
    %34 = vector.multi_reduction <add>, %33, %cst_23 [0] : vector<1x8x128xf32> to vector<8x128xf32>
    %35 = arith.addf %32, %34 : vector<8x128xf32>
    %c0_24 = arith.constant 0 : index
    %c0_25 = arith.constant 0 : index
    %36 = vector.load %arg8[%c0_24, %c0_25] : memref<8x128xf32, #tpu.memory_space<vmem>>, vector<8x128xf32>
    tpu.vector_store %arg8[%c0_24, %c0_25], %35 {strides = array<i32>} : memref<8x128xf32, #tpu.memory_space<vmem>>, vector<8x128xf32>,
    %c0_i32_26 = arith.constant 0 : i32
    %37 = arith.cmpi eq, %arg2, %c0_i32_26 : i32
    %38 = arith.extui %37 : i1 to i32
    %c0_i32_27 = arith.constant 0 : i32
    %39 = arith.cmpi ne, %38, %c0_i32_27 : i32
    scf.if %39 {
      %c0_28 = arith.constant 0 : index
      %c0_29 = arith.constant 0 : index
      %40 = vector.load %arg7[%c0_28, %c0_29] : memref<8x128xf32, #tpu.memory_space<vmem>>, vector<8x128xf32>
      %cst_30 = arith.constant dense<0.000000e+00> : vector<128xf32>
      %41 = vector.multi_reduction <add>, %40, %cst_30 [0] : vector<8x128xf32> to vector<128xf32>
      %42 = vector.shape_cast %41 : vector<128xf32> to vector<1x128xf32>
      %c0_31 = arith.constant 0 : index
      %c0_32 = arith.constant 0 : index
      %c0_33 = arith.constant 0 : index
      %c0_34 = arith.constant 0 : index
      %43 = vector.load %arg6[%c0_31, %c0_32, %c0_33, %c0_34] : memref<1x1x2x128xf32, #tpu.memory_space<vmem>>, vector<1x1x1x128xf32>
      %44 = vector.shape_cast %43 : vector<1x1x1x128xf32> to vector<1x128xf32>
      %45 = vector.shape_cast %42 : vector<1x128xf32> to vector<1x1x1x128xf32>
      tpu.vector_store %arg6[%c0_31, %c0_32, %c0_33, %c0_34], %45 {strides = array<i32>} : memref<1x1x2x128xf32, #tpu.memory_space<vmem>>, vector<1x1x1x128xf32>,
      %c0_35 = arith.constant 0 : index
      %c0_36 = arith.constant 0 : index
      %46 = vector.load %arg8[%c0_35, %c0_36] : memref<8x128xf32, #tpu.memory_space<vmem>>, vector<8x128xf32>
      %cst_37 = arith.constant dense<0.000000e+00> : vector<128xf32>
      %47 = vector.multi_reduction <add>, %46, %cst_37 [0] : vector<8x128xf32> to vector<128xf32>
      %48 = vector.shape_cast %47 : vector<128xf32> to vector<1x128xf32>
      %c0_38 = arith.constant 0 : index
      %c0_39 = arith.constant 0 : index
      %c1_40 = arith.constant 1 : index
      %c0_41 = arith.constant 0 : index
      %49 = vector.load %arg6[%c0_38, %c0_39, %c1_40, %c0_41] : memref<1x1x2x128xf32, #tpu.memory_space<vmem>>, vector<1x1x1x128xf32>
      %50 = vector.shape_cast %49 : vector<1x1x1x128xf32> to vector<1x128xf32>
      %51 = vector.shape_cast %48 : vector<1x128xf32> to vector<1x1x1x128xf32>
      tpu.vector_store %arg6[%c0_38, %c0_39, %c1_40, %c0_41], %51 {strides = array<i32>} : memref<1x1x2x128xf32, #tpu.memory_space<vmem>>, vector<1x1x1x128xf32>,
    } else {
    }
    return
  }
  func.func @transform_0(%arg0: i32, %arg1: i32, %arg2: i32) -> (i32, i32, i32, i32) {
    %c1_i32 = arith.constant 1 : i32
    %0 = arith.muli %arg1, %c1_i32 : i32
    %1 = arith.addi %0, %arg2 : i32
    %c0_i32 = arith.constant 0 : i32
    %2 = arith.minsi %1, %c0_i32 : i32
    %c0_i32_0 = arith.constant 0 : i32
    %c0_i32_1 = arith.constant 0 : i32
    %c0_i32_2 = arith.constant 0 : i32
    return %arg0, %c0_i32_0, %2, %c0_i32_1 : i32, i32, i32, i32
  }
  func.func @transform_1(%arg0: i32, %arg1: i32, %arg2: i32) -> (i32, i32, i32) {
    %c1_i32 = arith.constant 1 : i32
    %0 = arith.muli %arg1, %c1_i32 : i32
    %1 = arith.addi %0, %arg2 : i32
    %c0_i32 = arith.constant 0 : i32
    %2 = arith.minsi %1, %c0_i32 : i32
    %c0_i32_0 = arith.constant 0 : i32
    %c0_i32_1 = arith.constant 0 : i32
    return %arg0, %2, %c0_i32_0 : i32, i32, i32
  }
  func.func @transform_2(%arg0: i32, %arg1: i32, %arg2: i32) -> (i32, i32, i32) {
    %c1_i32 = arith.constant 1 : i32
    %0 = arith.muli %arg1, %c1_i32 : i32
    %1 = arith.addi %0, %arg2 : i32
    %c0_i32 = arith.constant 0 : i32
    %2 = arith.minsi %1, %c0_i32 : i32
    %c0_i32_0 = arith.constant 0 : i32
    %c0_i32_1 = arith.constant 0 : i32
    return %arg0, %2, %c0_i32_0 : i32, i32, i32
  }
  func.func @transform_3(%arg0: i32, %arg1: i32, %arg2: i32) -> (i32, i32, i32, i32) {
    %c0_i32 = arith.constant 0 : i32
    %c0_i32_0 = arith.constant 0 : i32
    %c0_i32_1 = arith.constant 0 : i32
    return %arg0, %arg1, %c0_i32, %c0_i32_0 : i32, i32, i32, i32
  }
}

</mosaic_0001>

<bundles_post_ra>
// kernel: tpu_custom_call.1
= control target key start
LH: loop header
LB: loop body
LE: loop exit
PB: predicated region body
PF: predicated region fallthrough
CT: control target
= control target key end

     0   :  { %s1009_s0 = inlined_call_operand.hbm [shape: f32[2,2,8,128], index: 0, kind: input, shape index: {}]   ;;  %s1010_s1 = inlined_call_operand.hbm [shape: s32[2,8,128], index: 1, kind: input, shape index: {}]   ;;  %s1011_s2 = inlined_call_operand.hbm [shape: s32[2,8,128], index: 2, kind: input, shape index: {}]   ;;  %s1012_s3 = inlined_call_operand.hbm [shape: f32[2,1,2,128], index: 3, kind: output, shape index: {}]  }
   0x1   :  { %1014 = sst [smem:[#allocation14_spill]] %s1009_s0 }
   0x2   :  { %1015 = sst [smem:[#allocation15_spill]] %s1010_s1 }
   0x3   :  { %1016 = sst [smem:[#allocation16_spill]] %s1011_s2 }
   0x4   :  { %8 = vsyncpa [#allocation5], 0 }
   0x5   :  { %10 = vsyncpa [#allocation5 + $0x1], 0 }
   0x6   :  { %11 = vsyncpa [#allocation8], 0 }
   0x7   :  { %13 = vsyncpa [#allocation8 + $0x1], 0 }
   0x8   :  { %14 = vsyncpa [#allocation6], 0 }
   0x9   :  { %16 = vsyncpa [#allocation6 + $0x1], 0  ;;  %s825_s12 = smov 0   ;;  %s827_s13 = smov 0  }
   0xa   :  { %s829_s14 = smov 0   ;;  %s831_s15 = smov 0  }
   0xb   :  { %s833_s16 = smov 0   ;;  %s835_s17 = smov 0  }
   0xc LB: > { %s856_s18 = sadd.s32 4294967295, %s797_s17   ;;  %s530_s19 = sadd.s32 4294967294, %s797_s17   ;;  %s797_s17 = sphi %s835_s17, %s22_s17   ;;  %s793_s16 = sphi %s833_s16, %s1032_s16   ;;  %s789_s15 = sphi %s831_s15, %s1031_s15   ;;  %s785_s14 = sphi %s829_s14, %s1030_s14   ;;  %s781_s13 = sphi %s827_s13, %s1029_s13   ;;  %s777_s12 = sphi %s825_s12, %s1028_s12  }
   0xd   : > { %s41_s20 = sadd.s32 1, %s793_s16  ;;  %s56_s21 = sadd.s32 1, %s785_s14 }
   0xe   : > { %p43_p0 = scmp.ge.s32.totalorder %s41_s20, 2  ;;  %p63_p1 = scmp.ne.s32.totalorder %s785_s14, %s781_s13 }
   0xf   : > { %p64_p2 = scmp.eq.s32.totalorder %s797_s17, 0  ;;  %p69_p3 = scmp.ne.s32.totalorder %s781_s13, %s777_s12 }
  0x10   : > { %s1034_s20 = smov (%p43_p0, %s41_s20), 0  ;;  %p70_p5 = scmp.eq.s32.totalorder %s856_s18, 0 }
  0x11   : > { %p868_p4 = por %p64_p2, %p63_p1  ;;  %s51_s23 = ssub.s32 %s793_s16, %s1034_s20 }
  0x12   : > { %p163_p6 = scmp.eq.s32.totalorder %s856_s18, 1  ;;  %p54_p7 = scmp.eq.s32.totalorder %s51_s23, 0 }
  0x13   : > { %p876_p8 = por %p70_p5, %p69_p3  ;;  %p169_p10 = scmp.eq.s32.totalorder %s530_s19, 1 }
  0x14   : > { %p880_p9 = por %p163_p6, %p63_p1  ;;  %p573_p13 = scmp.lt.s32.totalorder %s797_s17, 2 }
  0x15   : > { %s885_s26 = scalar_select %p54_p7, %s785_s14, %s56_s21  }
  0x16   : > { %p887_p11 = por %p169_p10, %p69_p3  ;;  %s894_s28 = sand.u32 1, %s785_s14  }
  0x17   : > { %s214_s29 = sand.u32 1, %s797_s17   ;;  %s1013_s30 = sshll.u32 %s894_s28, 3 }
  0x18   : > { %p900_p0 = pnand %p573_p13, %p868_p4  ;;  %s537_s5 = sshll.u32 %s793_s16, 7 }
  0x19   : > { %s1022_s1 = sld [smem:[#allocation15_spill]]  ;;  %s218_s9 = scalar_lea.vmem [#allocation7], %s1013_s30 }
  0x1a   : > { %s229_s10 = sshll.u32 %s218_s9, 4  ;;  %s1023_s2 = sld [smem:[#allocation16_spill]]  ;;  %s230_s10 = int_to_ptr.vmem [resolvable:$true] %s229_s10 }
  0x1b   : > { %s915_s22 = scalar_lea.sflag [#allocation8], %s214_s29  ;;  %p631_p1 = pneg %p900_p0 }
  0x1c   : > { %s642_s23 = scalar_lea.vmem %s230_s10, 128  ;;  %s799_s6 = smov [#allocation7]  }
  0x1d   : > { %p643_p2 = scmp.ne.s32.totalorder %s230_s10, %s642_s23  ;;  %s647_s7 = sshll.u32 %s799_s6, 4  ;;  %s648_s7 = int_to_ptr.vmem [resolvable:$false] %s647_s7 }
  0x1e   : > { %s649_s9 = scalar_lea.vmem %s648_s7, 256  ;;  %p650_p5 = scmp.lt.s32.totalorder %s230_s10, %s648_s7 }
  0x1f   : > { %s227_s8 = scalar_lea.hbm %s1022_s1, %s537_s5  ;;  %p645_p3 = pnand %p643_p2, %p631_p1 }
  0x20   : > { %s913_s21 = scalar_lea.hbm %s1023_s2, %s537_s5  ;;  %p651_p6 = scmp.lt.s32.totalorder %s649_s9, %s642_s23 }
  0x21   : > { %p646_p4 = pneg %p645_p3 }
  0x22   : > { %p652_p7 = por %p651_p6, %p650_p5 }
  0x24   : > { %p653_p10 = pnand %p652_p7, %p646_p4 }
  0x26   : > { %656 = shalt.err (!%p653_p10)
}
  0x27   : > { %565 = dma.hbm_to_vmem [thread:$0]  (!%p900_p0), %s227_s8, 128, %s230_s10, %s915_s22  }
  0x28   : > { %p540_p13 = scmp.ge.s32.totalorder %s797_s17, 1  ;;  %p256_p2 = scmp.lt.s32.totalorder %s797_s17, 3 }
  0x29   : > { %s533_s5 = sshll.u32 %s894_s28, 4  ;;  %s550_s11 = sshll.u32 %s793_s16, 8 }
  0x2a   : > { %p927_p3 = pnand %p540_p13, %p256_p2  ;;  %s1025_s0 = sld [smem:[#allocation14_spill]] }
  0x2b   : > { %s193_s7 = scalar_lea.vmem [#allocation4], %s533_s5  ;;  %s190_s30 = scalar_lea.sflag [#allocation5], %s894_s28 }
  0x2c   : > { %s204_s9 = sshll.u32 %s193_s7, 4  ;;  %s800_s8 = smov [#allocation4]   ;;  %s205_s9 = int_to_ptr.vmem [resolvable:$true] %s204_s9 }
  0x2d   : > { %s670_s1 = scalar_lea.vmem %s205_s9, 256  ;;  %s675_s10 = sshll.u32 %s800_s8, 4  ;;  %s676_s10 = int_to_ptr.vmem [resolvable:$false] %s675_s10 }
  0x2e   : > { %p671_p4 = scmp.ne.s32.totalorder %s205_s9, %s670_s1  ;;  %s677_s2 = scalar_lea.vmem %s676_s10, 512 }
  0x2f   : > { %p678_p7 = scmp.lt.s32.totalorder %s205_s9, %s676_s10  ;;  %p679_p10 = scmp.lt.s32.totalorder %s677_s2, %s670_s1 }
  0x30   : > { %s203_s6 = scalar_lea.hbm %s1025_s0, %s550_s11  ;;  %p673_p5 = pnand %p671_p4, %p631_p1 }
  0x31   : > { %p680_p13 = por %p679_p10, %p678_p7 }
  0x32   : > { %p674_p6 = pneg %p673_p5 }
  0x34   : > { %p681_p2 = pnand %p680_p13, %p674_p6 }
  0x36   : > { %684 = shalt.err (!%p681_p2)
}
  0x37   : > { %s801_s11 = smov 128   ;;  %s802_s5 = smov 8  }
  0x38   : > { %562 = dma.hbm_to_vmem [thread:$0]  (!%p900_p0), %s203_s6, 256, %s205_s9, %s190_s30, %s801_s11, %s801_s11, %s802_s5  }
  0x39   : > { %s1026_s19 = sshll.u32 %s894_s28, 3  ;;  %s803_s1 = smov [#allocation9]  }
  0x3a   : > { %s240_s23 = scalar_lea.vmem [#allocation9], %s1026_s19  ;;  %s703_s2 = sshll.u32 %s803_s1, 4  ;;  %s704_s2 = int_to_ptr.vmem [resolvable:$false] %s703_s2 }
  0x3b   : > { %s251_s7 = sshll.u32 %s240_s23, 4  ;;  %s705_s8 = scalar_lea.vmem %s704_s2, 256  ;;  %s252_s7 = int_to_ptr.vmem [resolvable:$true] %s251_s7 }
  0x3c   : > { %s698_s0 = scalar_lea.vmem %s252_s7, 128  ;;  %p706_p6 = scmp.lt.s32.totalorder %s252_s7, %s704_s2 }
  0x3d   : > { %p699_p4 = scmp.ne.s32.totalorder %s252_s7, %s698_s0  ;;  %p707_p7 = scmp.lt.s32.totalorder %s705_s8, %s698_s0 }
  0x3f   : > { %p701_p5 = pnand %p699_p4, %p631_p1  ;;  %p708_p10 = por %p707_p7, %p706_p6 }
  0x41   : > { %p702_p12 = pneg %p701_p5 }
  0x43   : > { %p709_p13 = pnand %p708_p10, %p702_p12 }
  0x45   : > { %712 = shalt.err (!%p709_p13)
}
  0x46   : > { %568 = dma.hbm_to_vmem [thread:$0]  (!%p900_p0), %s913_s21, 128, %s252_s7, %s915_s22  }
  0x47   : > { %260 = sbr.rel (%p927_p3) target bundleno = 154 (0x9a), region = 32  ;;  %s954_s28 = sand.u32 (!%p927_p3), 1, %s781_s13  }
  0x48   : > { %s541_s30 = sshll.u32 (!%p927_p3), %s954_s28, 4  ;;  %s263_s6 = scalar_lea.sflag (!%p927_p3), [#allocation5], %s954_s28 }
  0x49   : > { %s266_s0 = scalar_lea.vmem (!%p927_p3), [#allocation4], %s541_s30 }
  0x4c   : > { %764 = dma.done.wait (%p876_p8), %s263_s6, 256  }
  0x4d   : > { %766 = vsyncadd (%p876_p8), %s263_s6, 4294967040  ;;  %s271_s4 = sand.u32 1, %s856_s18   ;;  %s542_s21 = sshll.u32 %s954_s28, 3 }
  0x4e   : > { %s272_s22 = scalar_lea.sflag [#allocation8], %s271_s4  ;;  %s275_s29 = scalar_lea.vmem [#allocation7], %s542_s21 }
  0x4f   : > { %768 = dma.done.wait (%p876_p8), %s272_s22, 256  }
  0x50   : > { %770 = vsyncadd (%p876_p8), %s272_s22, 4294967040  ;;  %v545_v0 = vld [vmem:[%s266_s0 + $0x8] sm:$0xff]  ;;  %v334_v1 = vld [vmem:[%s266_s0] sm:$0xff]  ;;  %s284_s9 = scalar_lea.vmem [#allocation9], %s542_s21  ;;  %s544_s18 = sshll.u32 %s954_s28, 1 }
  0x51   : > { %v336_v2 = vld [vmem:[%s275_s29] sm:$0xff]  ;;  %v335_v3 = vsub.f32 %v545_v0, %v334_v1  ;;  %v337_v4 = vld [vmem:[%s284_s9] sm:$0xff]  ;;  %s316_s24 = scalar_lea.vmem [#allocation10], %s544_s18  ;;  %s547_s11 = sshll.u32 %s789_s15, 5 }
  0x52   : > { %v338_v5 = vcvt.s32.f32 %v337_v4  ;;  %vm339_vm0 = vcmp.gt.s32.totalorder %v336_v2, 0  ;;  %s400_s10 = sshll.u32 %s316_s24, 4  ;;  %s398_s23 = scalar_lea.hbm %s1012_s3, %s547_s11  ;;  %s401_s10 = int_to_ptr.vmem [resolvable:$true] %s400_s10 }
  0x53   : > { %v340_v6 = vsub.f32 0.0, %v335_v3  ;;  %s386_s7 = scalar_lea.sflag [#allocation6], %s954_s28  ;;  %s713_s1 = scalar_lea.vmem %s401_s10, 32 }
  0x54   : > { %v378_v7 = vrot.slane %v338_v5, 4  ;;  %p714_p8 = scmp.ne.s32.totalorder %s401_s10, %s713_s1  ;;  %s804_s2 = smov [#allocation10]  }
  0x55   : > { %v341_v8 = vsel %vm339_vm0, %v340_v6, %v335_v3  ;;  %s717_s8 = sshll.u32 %s804_s2, 4  ;;  %s718_s8 = int_to_ptr.vmem [resolvable:$false] %s717_s8 }
  0x56   : > { %v343_v9 = vand.u32 2147483647, %v341_v8  ;;  %v379_v10 = vadd.f32 %v378_v7, %v338_v5  ;;  %v342_v24 = vmax.f32 %v341_v8, 0.0  ;;  %p715_p12 = pnand %p714_p8, %p880_p9  ;;  %s719_s30 = scalar_lea.vmem %s718_s8, 64 }
  0x57   : > { %p720_p1 = scmp.lt.s32.totalorder %s401_s10, %s718_s8  ;;  %p721_p3 = scmp.lt.s32.totalorder %s719_s30, %s713_s1 }
  0x58   : > { %v344_v11 = vsub.f32 0.0, %v343_v9  ;;  %v380_v12 = vrot.slane %v379_v10, 2  ;;  %p716_p0 = pneg %p715_p12 }
  0x59   : > { %p722_p2 = por %p721_p3, %p720_p1 }
  0x5a   : > { %v345_v13 = vmul.f32 1.442695, %v344_v11  ;;  %v381_v14 = vadd.f32 %v380_v12, %v379_v10 }
  0x5b   : > { %p723_p4 = pnand %p722_p2, %p716_p0 }
  0x5c   : > { %625 = vpow2.f32 %v345_v13  ;;  %v382_v15 = vrot.slane %v381_v14, 1 }
  0x5e   : > { %v383_v16 = vadd.f32 %v382_v15, %v381_v14 }
  0x60   : > { %384 = vst [vmem:[%s316_s24 + $0x1] sm:$0x1] %v383_v16 }
  0x69   : > { %v626_v17 = vpop.eup %625 }
  0x6a   : > { %v347_v18 = vadd.f32 1.0, %v626_v17  ;;  %v350_v19 = vmul.f32 -0.5, %v626_v17  ;;  %v353_v21 = vand.u32 2147483647, %v626_v17 }
  0x6c   : > { %627 = vlog2.f32 %v347_v18  ;;  %v351_v20 = vadd.f32 1.0, %v350_v19  ;;  %vm354_vm1 = vcmp.lt.f32.partialorder %v353_v21, 0.0004427343 }
  0x6e   : > { %v352_v22 = vmul.f32 %v626_v17, %v351_v20 }
  0x79   : > { %v628_v23 = vpop.eup %627 }
  0x7a   : > { %v349_v25 = vmul.f32 0.6931472, %v628_v23 }
  0x7c   : > { %v355_v26 = vsel %vm354_vm1, %v352_v22, %v349_v25 }
  0x7d   : > { %v356_v27 = vadd.f32 %v355_v26, %v342_v24 }
  0x7f   : > { %v358_v28 = vmul.f32 %v356_v27, %v338_v5 }
  0x81   : > { %v370_v29 = vrot.slane %v358_v28, 4 }
  0x83   : > { %v371_v30 = vadd.f32 %v370_v29, %v358_v28 }
  0x85   : > { %v372_v31 = vrot.slane %v371_v30, 2 }
  0x87   : > { %v373_v32 = vadd.f32 %v372_v31, %v371_v30 }
  0x89   : > { %v374_v33 = vrot.slane %v373_v32, 1 }
  0x8b   : > { %v375_v34 = vadd.f32 %v374_v33, %v373_v32 }
  0x8d   : > { %376 = vst [vmem:[%s316_s24] sm:$0x1] %v375_v34 }
  0x8e   : > { %726 = shalt.err (!%p723_p4)
}
  0x8f   : > { %s727_s15 = scalar_lea.hbm %s398_s23, 32  ;;  %s731_s0 = scalar_lea.hbm %s1012_s3, 64 }
  0x90   : > { %p728_p5 = scmp.ne.s32.totalorder %s398_s23, %s727_s15  ;;  %p732_p10 = scmp.lt.s32.totalorder %s398_s23, %s1012_s3 }
  0x91   : > { %p733_p13 = scmp.lt.s32.totalorder %s731_s0, %s727_s15 }
  0x92   : > { %p729_p6 = pnand %p728_p5, %p880_p9 }
  0x93   : > { %p734_p8 = por %p733_p13, %p732_p10 }
  0x94   : > { %p730_p7 = pneg %p729_p6 }
  0x96   : > { %p735_p12 = pnand %p734_p8, %p730_p7 }
  0x98   : > { %738 = shalt.err (!%p735_p12)
}
  0x99   : > { %557 = dma.vmem_to_hbm [thread:$0]  (%p880_p9), %s401_s10, 32, %s398_s23, %s386_s7  }
  0x9a PF: > { %s412_s22 = sand.u32 1, %s777_s12   ;;  %p1027_p0 = scmp.ge.s32.totalorder %s797_s17, 2 }
  0x9b   : > { %s413_s29 = scalar_lea.sflag [#allocation6], %s412_s22 }
  0x9c   : > { %p570_p1 = pnand %p1027_p0, %p887_p11 }
  0x9e   : > { %p571_p3 = pneg %p570_p1 }
  0xa0   : > { %772 = dma.done.wait (%p571_p3), %s413_s29, 32  }
  0xa1   : > { %774 = vsyncadd (%p571_p3), %s413_s29, 4294967264  ;;  %s22_s17 = sadd.s32 1, %s797_s17   ;;  %s1028_s12 = smov %s781_s13 }
  0xa2   : > { %p19_p2 = scmp.ge.s32.totalorder %s22_s17, 4   ;;  %s1029_s13 = smov %s785_s14 }
  0xa3   : > { %s1030_s14 = smov %s885_s26  ;;  %s1031_s15 = smov %s793_s16 }
  0xa4   : > { %s1032_s16 = smov %s1034_s20  ;;  %21 = sbr.rel (!%p19_p2) target bundleno = 12 (0xc), region = 110 }
  0xa9   :  { %418 = vsyncpa [#allocation5], 1 }
  0xaa   :  { %420 = vsyncpa [#allocation5 + $0x1], 1 }
  0xab   :  { %421 = vsyncpa [#allocation8], 1 }
  0xac   :  { %423 = vsyncpa [#allocation8 + $0x1], 1 }
  0xad   :  { %424 = vsyncpa [#allocation6], 1 }
  0xae   :  { %426 = vsyncpa [#allocation6 + $0x1], 1 }

</bundles_post_ra>
